<compile_context>
chip_gen: v7x
topology: tpu7x:2x2x1
jax: 0.10.0
libtpu: 0.0.40
codegen_flags: <defaults>
</compile_context>

<pallas_src>
import functools

import jax
import jax.numpy as jnp
from jax.experimental import pallas as pl
from jax.experimental.pallas import tpu as pltpu


def _round_up(x, m):
    return ((x + m - 1) // m) * m


def _make_ce_kernel(n_rows, tile_rows, steps_per_chunk):
    """Kernel body closed over static sizing constants."""

    def kernel(pred_ref, tgt_ref, mask_ref, num_out, den_out, acc_num, acc_den):
        # pred_ref: (tn, V) native dtype   tgt_ref: (tn, 1) i32
        # mask_ref: (tn, 1) f32            num_out/den_out: (1, 1, 1) f32
        # acc_num/acc_den: (tn, 1) f32 VMEM accumulators (per chunk / per core)
        c = pl.program_id(0)
        i = pl.program_id(1)

        @pl.when(i == 0)
        def _init():
            acc_num[...] = jnp.zeros_like(acc_num)
            acc_den[...] = jnp.zeros_like(acc_den)

        # Row validity from the *unclamped* block index: padded grid steps and
        # the ragged tail of the last block contribute exactly zero.
        raw_blk = c * steps_per_chunk + i
        row = raw_blk * tile_rows + jax.lax.broadcasted_iota(
            jnp.int32, (tile_rows, 1), 0)
        valid = row < n_rows                                       # (tn, 1)

        pred = pred_ref[...]                                       # (tn, V)
        tgt = tgt_ref[...]                                         # (tn, 1)
        msk = mask_ref[...]                                        # (tn, 1)

        # gather(1, target): one-hot select over the lane (vocab) axis.
        col = jax.lax.broadcasted_iota(jnp.int32, pred.shape, 1)
        sel = jnp.where(col == tgt, pred, jnp.zeros((), pred.dtype))
        gathered = jnp.sum(sel, axis=1, keepdims=True).astype(jnp.float32)

        # Select (not multiply) so garbage tail rows can never poison the sum.
        acc_num[...] += jnp.where(valid, -gathered * msk, 0.0)
        acc_den[...] += jnp.where(valid, msk, 0.0)

        @pl.when(i == pl.num_programs(1) - 1)
        def _finalize():
            num_out[...] = jnp.sum(acc_num[...], axis=0,
                                   keepdims=True).reshape(num_out.shape)
            den_out[...] = jnp.sum(acc_den[...], axis=0,
                                   keepdims=True).reshape(den_out.shape)

    return kernel


@functools.partial(jax.jit, static_argnames=("block_bytes", "num_chunks"))
def cross_entropy_criterion(pred, target, mask, *,
                            block_bytes=4 * 1024 * 1024, num_chunks=2):
    """pred: (B, T, V) float (f32/bf16); target: (B, >=T) int; mask: (B, >=T)."""
    B, T, V = pred.shape
    N = B * T

    # pred stays in its native dtype: reshape of the contiguous (B,T,V) array
    # is free; only the tiny target/mask arrays are cast.
    pred2 = pred.reshape(N, V)
    tgt2 = target[:, :T].reshape(N, 1).astype(jnp.int32)
    msk2 = mask[:, :T].reshape(N, 1).astype(jnp.float32)

    # Row tile from a byte budget: pred block ~ block_bytes, double-buffered,
    # well under the 32 MiB scoped-VMEM budget on every generation.
    itemsize = jnp.dtype(pred.dtype).itemsize
    row_align = max(8, 32 // itemsize)          # 8 (f32) / 16 (bf16/f16)
    tn = max(row_align, block_bytes // max(1, V * itemsize))
    tn = min(tn, 2048, _round_up(N, row_align))
    tn = max(row_align, (tn // row_align) * row_align)

    num_blocks = pl.cdiv(N, tn)
    chunks = max(1, min(num_chunks, num_blocks))   # v7x: split over 2 TCs
    steps = pl.cdiv(num_blocks, chunks)

    if chunks * steps == num_blocks:
        def blk_map(c, i):
            return (c * steps + i, 0)
    else:
        def blk_map(c, i):
            # Padded grid steps re-read the last real block; the in-kernel
            # validity predicate zeroes their contribution.
            return (jnp.minimum(c * steps + i, num_blocks - 1), 0)

    kernel = _make_ce_kernel(N, tn, steps)

    num_parts, den_parts = pl.pallas_call(
        kernel,
        out_shape=(jax.ShapeDtypeStruct((chunks, 1, 1), jnp.float32),
                   jax.ShapeDtypeStruct((chunks, 1, 1), jnp.float32)),
        grid_spec=pltpu.PrefetchScalarGridSpec(
            num_scalar_prefetch=0,
            grid=(chunks, steps),
            in_specs=[
                pl.BlockSpec((tn, V), blk_map),
                pl.BlockSpec((tn, 1), blk_map),
                pl.BlockSpec((tn, 1), blk_map),
            ],
            out_specs=(
                pl.BlockSpec((1, 1, 1), lambda c, i: (c, 0, 0)),
                pl.BlockSpec((1, 1, 1), lambda c, i: (c, 0, 0)),
            ),
            scratch_shapes=[
                pltpu.VMEM((tn, 1), jnp.float32),   # per-row numerator partials
                pltpu.VMEM((tn, 1), jnp.float32),   # per-row denominator partials
            ],
        ),
        compiler_params=pltpu.CompilerParams(
            dimension_semantics=("parallel", "arbitrary"),
            vmem_limit_bytes=32 * 1024 * 1024),
        cost_estimate=pl.CostEstimate(
            flops=3 * N * V,
            transcendentals=0,
            bytes_accessed=N * V * itemsize + 8 * N + 8 * chunks),
    )(pred2, tgt2, msk2)

    # Trivial final divide in the wrapper keeps per-core partials independent.
    return jnp.sum(num_parts) / jnp.sum(den_parts)


def _reference(pred, target, mask):
    B, T, V = pred.shape
    tgt_f = target[:, :T].reshape(-1)
    msk_f = mask[:, :T].reshape(-1).astype(jnp.float32)
    pred_f = pred.reshape(-1, V).astype(jnp.float32)
    gathered = jnp.take_along_axis(pred_f, tgt_f[:, None].astype(jnp.int32),
                                   axis=1)[:, 0]
    return jnp.sum(-gathered * msk_f) / jnp.sum(msk_f)


if __name__ == "__main__":
    key = jax.random.PRNGKey(0)
    kp, kt, kp2, kt2 = jax.random.split(key, 4)

    # --- test 1: f32, single block ---------------------------------------
    B, T_pred, T_full, V = 2, 8, 10, 512
    logits = jax.random.normal(kp, (B, T_pred, V), jnp.float32)
    pred = jax.nn.log_softmax(logits, axis=-1)
    target = jax.random.randint(kt, (B, T_full), 0, V, jnp.int32)
    lengths = jnp.array([6, 4], dtype=jnp.int32)
    mask = (jnp.arange(T_full)[None, :] < lengths[:, None]).astype(jnp.float32)

    loss = jax.block_until_ready(cross_entropy_criterion(pred, target, mask))
    ref = _reference(pred, target, mask)
    assert loss.shape == ()
    assert jnp.allclose(loss, ref, atol=1e-5, rtol=1e-5), (loss, ref)

    # --- test 2: bf16 pred streamed natively ------------------------------
    pred_bf = pred.astype(jnp.bfloat16)
    loss_bf = jax.block_until_ready(
        cross_entropy_criterion(pred_bf, target, mask))
    ref_bf = _reference(pred_bf, target, mask)
    assert jnp.allclose(loss_bf, ref_bf, atol=1e-3, rtol=1e-3), (loss_bf, ref_bf)

    # --- test 3: multi-block grid, ragged tail, odd block count (clamping) -
    B3, T3_pred, T3_full = 2, 10, 12
    logits3 = jax.random.normal(kp2, (B3, T3_pred, V), jnp.float32)
    pred3 = jax.nn.log_softmax(logits3, axis=-1)
    target3 = jax.random.randint(kt2, (B3, T3_full), 0, V, jnp.int32)
    lengths3 = jnp.array([7, 5], dtype=jnp.int32)
    mask3 = (jnp.arange(T3_full)[None, :] < lengths3[:, None]).astype(jnp.float32)

    loss3 = jax.block_until_ready(
        cross_entropy_criterion(pred3, target3, mask3, block_bytes=16 * 1024))
    ref3 = _reference(pred3, target3, mask3)
    assert jnp.allclose(loss3, ref3, atol=1e-5, rtol=1e-5), (loss3, ref3)

    print("KERNEL_OK")
</pallas_src>

<mosaic_0001>
module attributes {stable_mosaic.version = 11 : i64} {
  func.func @kernel(%arg0: i32, %arg1: i32, %arg2: memref<16x512xf32, #tpu.memory_space<vmem>>, %arg3: memref<16x1xi32, #tpu.memory_space<vmem>>, %arg4: memref<16x1xf32, #tpu.memory_space<vmem>>, %arg5: memref<1x1x1xf32, #tpu.memory_space<vmem>>, %arg6: memref<1x1x1xf32, #tpu.memory_space<vmem>>, %arg7: memref<16x1xf32, #tpu.memory_space<vmem>>, %arg8: memref<16x1xf32, #tpu.memory_space<vmem>>) attributes {dimension_semantics = [#tpu.dimension_semantics<parallel>, #tpu.dimension_semantics<arbitrary>], iteration_bounds = array<i64: 1, 1>, scalar_prefetch = 0 : i64, scratch_operands = 2 : i64, tpu.core_type = #tpu.core_type<tc>, window_params = [{transform_indices = @transform_0, window_bounds = array<i64: 16, 512>}, {transform_indices = @transform_1, window_bounds = array<i64: 16, 1>}, {transform_indices = @transform_2, window_bounds = array<i64: 16, 1>}, {transform_indices = @transform_3, window_bounds = array<i64: 1, 1, 1>}, {transform_indices = @transform_4, window_bounds = array<i64: 1, 1, 1>}]} {
    %c0_i32 = arith.constant 0 : i32
    %0 = arith.cmpi eq, %arg1, %c0_i32 : i32
    %1 = arith.extui %0 : i1 to i32
    %c0_i32_0 = arith.constant 0 : i32
    %2 = arith.cmpi ne, %1, %c0_i32_0 : i32
    scf.if %2 {
      %cst_21 = arith.constant 0.000000e+00 : f32
      %37 = vector.broadcast %cst_21 : f32 to vector<16x1xf32>
      %c0_22 = arith.constant 0 : index
      %c0_23 = arith.constant 0 : index
      %38 = vector.load %arg7[%c0_22, %c0_23] : memref<16x1xf32, #tpu.memory_space<vmem>>, vector<16x1xf32>
      tpu.vector_store %arg7[%c0_22, %c0_23], %37 {strides = array<i32>} : memref<16x1xf32, #tpu.memory_space<vmem>>, vector<16x1xf32>,
      %cst_24 = arith.constant 0.000000e+00 : f32
      %39 = vector.broadcast %cst_24 : f32 to vector<16x1xf32>
      %c0_25 = arith.constant 0 : index
      %c0_26 = arith.constant 0 : index
      %40 = vector.load %arg8[%c0_25, %c0_26] : memref<16x1xf32, #tpu.memory_space<vmem>>, vector<16x1xf32>
      tpu.vector_store %arg8[%c0_25, %c0_26], %39 {strides = array<i32>} : memref<16x1xf32, #tpu.memory_space<vmem>>, vector<16x1xf32>,
    } else {
    }
    %c1_i32 = arith.constant 1 : i32
    %3 = arith.muli %arg0, %c1_i32 : i32
    %4 = arith.addi %3, %arg1 : i32
    %c16_i32 = arith.constant 16 : i32
    %5 = arith.muli %4, %c16_i32 : i32
    %6 = tpu.iota {dimensions = array<i32: 0>} : vector<16x1xi32>
    %7 = vector.broadcast %5 : i32 to vector<16x1xi32>
    %8 = arith.addi %7, %6 : vector<16x1xi32>
    %c16_i32_1 = arith.constant 16 : i32
    %9 = vector.broadcast %c16_i32_1 : i32 to vector<16x1xi32>
    %10 = arith.cmpi slt, %8, %9 : vector<16x1xi32>
    %c0 = arith.constant 0 : index
    %c0_2 = arith.constant 0 : index
    %11 = vector.load %arg2[%c0, %c0_2] : memref<16x512xf32, #tpu.memory_space<vmem>>, vector<16x512xf32>
    %c0_3 = arith.constant 0 : index
    %c0_4 = arith.constant 0 : index
    %12 = vector.load %arg3[%c0_3, %c0_4] : memref<16x1xi32, #tpu.memory_space<vmem>>, vector<16x1xi32>
    %c0_5 = arith.constant 0 : index
    %c0_6 = arith.constant 0 : index
    %13 = vector.load %arg4[%c0_5, %c0_6] : memref<16x1xf32, #tpu.memory_space<vmem>>, vector<16x1xf32>
    %14 = tpu.iota {dimensions = array<i32: 1>} : vector<16x512xi32>
    %15 = vector.broadcast %12 : vector<16x1xi32> to vector<16x512xi32>
    %16 = arith.cmpi eq, %14, %15 : vector<16x512xi32>
    %cst = arith.constant 0.000000e+00 : f32
    %17 = vector.broadcast %cst : f32 to vector<16x512xf32>
    %18 = arith.select %16, %11, %17 : vector<16x512xi1>, vector<16x512xf32>
    %cst_7 = arith.constant dense<0.000000e+00> : vector<16xf32>
    %19 = vector.multi_reduction <add>, %18, %cst_7 [1] : vector<16x512xf32> to vector<16xf32>
    %20 = vector.shape_cast %19 : vector<16xf32> to vector<16x1xf32>
    %c0_8 = arith.constant 0 : index
    %c0_9 = arith.constant 0 : index
    %21 = vector.load %arg7[%c0_8, %c0_9] : memref<16x1xf32, #tpu.memory_space<vmem>>, vector<16x1xf32>
    %cst_10 = arith.constant 0.000000e+00 : f32
    %22 = vector.broadcast %cst_10 : f32 to vector<16x1xf32>
    %23 = arith.subf %22, %20 : vector<16x1xf32>
    %24 = arith.mulf %23, %13 : vector<16x1xf32>
    %cst_11 = arith.constant 0.000000e+00 : f32
    %25 = vector.broadcast %cst_11 : f32 to vector<16x1xf32>
    %26 = arith.select %10, %24, %25 : vector<16x1xi1>, vector<16x1xf32>
    %27 = arith.addf %21, %26 : vector<16x1xf32>
    %c0_12 = arith.constant 0 : index
    %c0_13 = arith.constant 0 : index
    %28 = vector.load %arg7[%c0_12, %c0_13] : memref<16x1xf32, #tpu.memory_space<vmem>>, vector<16x1xf32>
    tpu.vector_store %arg7[%c0_12, %c0_13], %27 {strides = array<i32>} : memref<16x1xf32, #tpu.memory_space<vmem>>, vector<16x1xf32>,
    %c0_14 = arith.constant 0 : index
    %c0_15 = arith.constant 0 : index
    %29 = vector.load %arg8[%c0_14, %c0_15] : memref<16x1xf32, #tpu.memory_space<vmem>>, vector<16x1xf32>
    %cst_16 = arith.constant 0.000000e+00 : f32
    %30 = vector.broadcast %cst_16 : f32 to vector<16x1xf32>
    %31 = arith.select %10, %13, %30 : vector<16x1xi1>, vector<16x1xf32>
    %32 = arith.addf %29, %31 : vector<16x1xf32>
    %c0_17 = arith.constant 0 : index
    %c0_18 = arith.constant 0 : index
    %33 = vector.load %arg8[%c0_17, %c0_18] : memref<16x1xf32, #tpu.memory_space<vmem>>, vector<16x1xf32>
    tpu.vector_store %arg8[%c0_17, %c0_18], %32 {strides = array<i32>} : memref<16x1xf32, #tpu.memory_space<vmem>>, vector<16x1xf32>,
    %c0_i32_19 = arith.constant 0 : i32
    %34 = arith.cmpi eq, %arg1, %c0_i32_19 : i32
    %35 = arith.extui %34 : i1 to i32
    %c0_i32_20 = arith.constant 0 : i32
    %36 = arith.cmpi ne, %35, %c0_i32_20 : i32
    scf.if %36 {
      %c0_21 = arith.constant 0 : index
      %c0_22 = arith.constant 0 : index
      %37 = vector.load %arg7[%c0_21, %c0_22] : memref<16x1xf32, #tpu.memory_space<vmem>>, vector<16x1xf32>
      %cst_23 = arith.constant dense<0.000000e+00> : vector<1xf32>
      %38 = vector.multi_reduction <add>, %37, %cst_23 [0] : vector<16x1xf32> to vector<1xf32>
      %39 = vector.shape_cast %38 : vector<1xf32> to vector<1x1xf32>
      %40 = vector.shape_cast %39 : vector<1x1xf32> to vector<1x1x1xf32>
      %c0_24 = arith.constant 0 : index
      %c0_25 = arith.constant 0 : index
      %c0_26 = arith.constant 0 : index
      %41 = vector.load %arg5[%c0_24, %c0_25, %c0_26] : memref<1x1x1xf32, #tpu.memory_space<vmem>>, vector<1x1x1xf32>
      tpu.vector_store %arg5[%c0_24, %c0_25, %c0_26], %40 {strides = array<i32>} : memref<1x1x1xf32, #tpu.memory_space<vmem>>, vector<1x1x1xf32>,
      %c0_27 = arith.constant 0 : index
      %c0_28 = arith.constant 0 : index
      %42 = vector.load %arg8[%c0_27, %c0_28] : memref<16x1xf32, #tpu.memory_space<vmem>>, vector<16x1xf32>
      %cst_29 = arith.constant dense<0.000000e+00> : vector<1xf32>
      %43 = vector.multi_reduction <add>, %42, %cst_29 [0] : vector<16x1xf32> to vector<1xf32>
      %44 = vector.shape_cast %43 : vector<1xf32> to vector<1x1xf32>
      %45 = vector.shape_cast %44 : vector<1x1xf32> to vector<1x1x1xf32>
      %c0_30 = arith.constant 0 : index
      %c0_31 = arith.constant 0 : index
      %c0_32 = arith.constant 0 : index
      %46 = vector.load %arg6[%c0_30, %c0_31, %c0_32] : memref<1x1x1xf32, #tpu.memory_space<vmem>>, vector<1x1x1xf32>
      tpu.vector_store %arg6[%c0_30, %c0_31, %c0_32], %45 {strides = array<i32>} : memref<1x1x1xf32, #tpu.memory_space<vmem>>, vector<1x1x1xf32>,
    } else {
    }
    return
  }
  func.func @transform_0(%arg0: i32, %arg1: i32) -> (i32, i32) {
    %c1_i32 = arith.constant 1 : i32
    %0 = arith.muli %arg0, %c1_i32 : i32
    %1 = arith.addi %0, %arg1 : i32
    %c0_i32 = arith.constant 0 : i32
    %c0_i32_0 = arith.constant 0 : i32
    return %1, %c0_i32 : i32, i32
  }
  func.func @transform_1(%arg0: i32, %arg1: i32) -> (i32, i32) {
    %c1_i32 = arith.constant 1 : i32
    %0 = arith.muli %arg0, %c1_i32 : i32
    %1 = arith.addi %0, %arg1 : i32
    %c0_i32 = arith.constant 0 : i32
    %c0_i32_0 = arith.constant 0 : i32
    return %1, %c0_i32 : i32, i32
  }
  func.func @transform_2(%arg0: i32, %arg1: i32) -> (i32, i32) {
    %c1_i32 = arith.constant 1 : i32
    %0 = arith.muli %arg0, %c1_i32 : i32
    %1 = arith.addi %0, %arg1 : i32
    %c0_i32 = arith.constant 0 : i32
    %c0_i32_0 = arith.constant 0 : i32
    return %1, %c0_i32 : i32, i32
  }
  func.func @transform_3(%arg0: i32, %arg1: i32) -> (i32, i32, i32) {
    %c0_i32 = arith.constant 0 : i32
    %c0_i32_0 = arith.constant 0 : i32
    %c0_i32_1 = arith.constant 0 : i32
    return %arg0, %c0_i32, %c0_i32_0 : i32, i32, i32
  }
  func.func @transform_4(%arg0: i32, %arg1: i32) -> (i32, i32, i32) {
    %c0_i32 = arith.constant 0 : i32
    %c0_i32_0 = arith.constant 0 : i32
    %c0_i32_1 = arith.constant 0 : i32
    return %arg0, %c0_i32, %c0_i32_0 : i32, i32, i32
  }
}

</mosaic_0001>

<bundles_post_ra>
// kernel: cross_entropy_criterion.1
= control target key start
LH: loop header
LB: loop body
LE: loop exit
PB: predicated region body
PF: predicated region fallthrough
CT: control target
= control target key end

     0   :  { %10 = vsyncpa [#allocation5], 0  ;;  %s415_s0 = inlined_call_operand.hbm [shape: f32[16,512], index: 0, kind: input, shape index: {}]   ;;  %s416_s1 = inlined_call_operand.vmem [shape: s32[16,1], index: 1, kind: input, shape index: {}]   ;;  %s417_s2 = inlined_call_operand.vmem [shape: f32[16,1], index: 2, kind: input, shape index: {}]   ;;  %s418_s3 = inlined_call_operand.hbm [shape: f32[1,1,1], index: 3, kind: output, shape index: {0}]   ;;  %s419_s4 = inlined_call_operand.hbm [shape: f32[1,1,1], index: 4, kind: output, shape index: {1}]  }
   0x1   :  { %11 = vsyncpa [#allocation6], 0 }
   0x2   :  { %12 = vsyncpa [#allocation9], 0  ;;  %s321_s15 = smov [#allocation4]   ;;  %s249_s19 = scalar_lea.hbm %s415_s0, 1024 }
   0x3   :  { %s23_s16 = sshll.u32 %s321_s15, 4  ;;  %p250_p0 = scmp.ne.s32.totalorder %s415_s0, %s249_s19  ;;  %s24_s16 = int_to_ptr.vmem [resolvable:$true] %s23_s16 }
   0x4   :  { %p253_p1 = scmp.lt.u32.totalorder %s249_s19, %s415_s0 }
   0x6   :  { %p255_p2 = pnand %p253_p1, %p250_p0 }
   0x8   :  { %258 = shalt.err (!%p255_p2)
}
   0x9   :  { %s259_s24 = scalar_lea.vmem %s24_s16, 1024  ;;  %p264_p4 = scmp.lt.s32.totalorder %s24_s16, %s24_s16 }
   0xa   :  { %p260_p3 = scmp.ne.s32.totalorder %s24_s16, %s259_s24  ;;  %p265_p5 = scmp.lt.s32.totalorder %s259_s24, %s259_s24 }
   0xc   :  { %p266_p6 = por %p265_p5, %p264_p4 }
   0xe   :  { %p267_p7 = pnand %p266_p6, %p260_p3 }
  0x10   :  { %270 = shalt.err (!%p267_p7)
}
  0x11   :  { %s322_s25 = smov 512   ;;  %s323_s26 = smov 32  }
  0x12   :  { %29 = dma.hbm_to_vmem [thread:$0]  %s415_s0, 1024, %s24_s16, [#allocation5], %s322_s25, %s322_s25, %s323_s26  }
  0x13   :  { %315 = dma.done.wait [#allocation5], 1024  }
  0x14   :  { %316 = vsyncadd [#allocation5], 4294966272  ;;  %v324_v0 = vmov 0   ;;  %v110_v1 = vld [vmem:[%s416_s1] sm:$0xff]  ;;  %v111_v2 = vld [vmem:[%s416_s1 + $0x8] sm:$0xff]  ;;  %vm87_vm0 = vcmask 7168   ;;  %v114_v4 = vlaneseq }
  0x15   :  { %248 = vset.pattern.permute.xlu0 %v324_v0  ;;  %v325_v3 = vmov 0.0   ;;  %v102_v8 = vld [vmem:[#allocation4] sm:$0xff]  ;;  %v103_v9 = vld [vmem:[#allocation4 + $0x8] sm:$0xff]  ;;  %v104_v12 = vld [vmem:[#allocation4 + $0x10] sm:$0xff]  ;;  %vm186_vm9 = vcmask 0  }
  0x16   :  { %120 = vperm.xlu0 %248, %v110_v1   ;;  %88 = vst.msk [vmem:[#allocation2] sm:$0xff] %vm87_vm0, %v325_v3  ;;  %90 = vst.msk [vmem:[#allocation3] sm:$0xff] %vm87_vm0, %v325_v3  ;;  %v115_v5 = vand.u32 127, %v114_v4  ;;  %v106_v15 = vld [vmem:[#allocation4 + $0x20] sm:$0xff]  ;;  %v107_v16 = vld [vmem:[#allocation4 + $0x28] sm:$0xff] }
  0x17   :  { %89 = vst.msk [vmem:[#allocation2 + $0x8] sm:$0xff] %vm87_vm0, %v325_v3  ;;  %91 = vst.msk [vmem:[#allocation3 + $0x8] sm:$0xff] %vm87_vm0, %v325_v3  ;;  %v105_v17 = vld [vmem:[#allocation4 + $0x18] sm:$0xff]  ;;  %v108_v22 = vld [vmem:[#allocation4 + $0x30] sm:$0xff] }
  0x18   :  { %v116_v6 = vadd.s32 128, %v115_v5  ;;  %v117_v7 = vadd.s32 256, %v115_v5  ;;  %v118_v10 = vadd.s32 384, %v115_v5  ;;  %v109_v27 = vld [vmem:[#allocation4 + $0x38] sm:$0xff]  ;;  %v112_v33 = vld [vmem:[%s417_s2] sm:$0xff]  ;;  %v113_v36 = vld [vmem:[%s417_s2 + $0x8] sm:$0xff] }
  0x19   :  { %s326_s2 = smov [#allocation8]  }
  0x1a   :  { %123 = vperm.xlu0 %248, %v111_v2   ;;  %s216_s9 = sshll.u32 %s326_s2, 4  ;;  %s217_s9 = int_to_ptr.vmem [resolvable:$true] %s216_s9 }
  0x1b   :  { %s271_s10 = scalar_lea.vmem %s217_s9, 16  ;;  %s275_s11 = scalar_lea.vmem %s217_s9, 32 }
  0x1c   :  { %p272_p8 = scmp.ne.s32.totalorder %s217_s9, %s271_s10  ;;  %p276_p9 = scmp.lt.s32.totalorder %s217_s9, %s217_s9 }
  0x1d   :  { %v164_v34 = vld [vmem:[#allocation3] sm:$0xff]  ;;  %p277_p10 = scmp.lt.s32.totalorder %s275_s11, %s271_s10 }
  0x1e   :  { %v168_v35 = vadd.f32 %v164_v34, %v112_v33  ;;  %v165_v37 = vld [vmem:[#allocation3 + $0x8] sm:$0xff] }
  0x1f   :  { %v169_v38 = vadd.f32 %v165_v37, %v113_v36  ;;  %p278_p11 = por %p277_p10, %p276_p9 }
  0x20   :  { %170 = vst.msk [vmem:[#allocation3] sm:$0xff] %vm87_vm0, %v168_v35 }
  0x21   :  { %171 = vst.msk [vmem:[#allocation3 + $0x8] sm:$0xff] %vm87_vm0, %v169_v38  ;;  %p279_p12 = pnand %p278_p11, %p272_p8 }
  0x27   :  { %v188_v39 = vld [vmem:[#allocation3] sm:$0xff] }
  0x28   :  { %v189_v40 = vld [vmem:[#allocation3 + $0x8] sm:$0xff]  ;;  %v190_v41 = vsel %vm87_vm0, %v188_v39, 0.0 }
  0x29   :  { %v191_v42 = vsel %vm87_vm0, %v189_v40, 0.0 }
  0x2a   :  { %v192_v43 = vadd.f32 %v191_v42, %v190_v41 }
  0x2c   :  { %v193_v44 = vrot.slane %v192_v43, 4 }
  0x2e   :  { %v194_v45 = vadd.f32 %v193_v44, %v192_v43 }
  0x30   :  { %v195_v46 = vrot.slane %v194_v45, 2 }
  0x32   :  { %v196_v47 = vadd.f32 %v195_v46, %v194_v45 }
  0x34   :  { %v197_v48 = vrot.slane %v196_v47, 1 }
  0x36   :  { %v198_v49 = vadd.f32 %v197_v48, %v196_v47 }
  0x38   :  { %199 = vst.msk [vmem:[#allocation8] sm:$0x1] %vm186_vm9, %v198_v49 }
  0x95   :  { %v121_v11 = vpop.permute.xlu0 %120 }
  0x96   :  { %vm125_vm1 = vcmp.eq.s32.totalorder %v115_v5, %v121_v11  ;;  %vm126_vm2 = vcmp.eq.s32.totalorder %v116_v6, %v121_v11  ;;  %vm127_vm3 = vcmp.eq.s32.totalorder %v117_v7, %v121_v11  ;;  %vm128_vm4 = vcmp.eq.s32.totalorder %v118_v10, %v121_v11 }
  0x97   :  { %v133_v13 = vsel %vm125_vm1, %v102_v8, 0.0  ;;  %v134_v14 = vsel %vm126_vm2, %v103_v9, 0.0  ;;  %v135_v20 = vsel %vm127_vm3, %v104_v12, 0.0  ;;  %v136_v25 = vsel %vm128_vm4, %v105_v17, 0.0 }
  0x98   :  { %v141_v18 = vadd.f32 %v134_v14, %v133_v13 }
  0x99   :  { %v124_v19 = vpop.permute.xlu0 %123 }
  0x9a   :  { %vm129_vm5 = vcmp.eq.s32.totalorder %v115_v5, %v124_v19  ;;  %vm130_vm6 = vcmp.eq.s32.totalorder %v116_v6, %v124_v19  ;;  %vm131_vm7 = vcmp.eq.s32.totalorder %v117_v7, %v124_v19  ;;  %v142_v21 = vadd.f32 %v141_v18, %v135_v20 }
  0x9b   :  { %v137_v23 = vsel %vm129_vm5, %v106_v15, 0.0  ;;  %v138_v24 = vsel %vm130_vm6, %v107_v16, 0.0  ;;  %vm132_vm8 = vcmp.eq.s32.totalorder %v118_v10, %v124_v19  ;;  %v139_v29 = vsel %vm131_vm7, %v108_v22, 0.0 }
  0x9c   :  { %v143_v26 = vadd.f32 %v142_v21, %v136_v25  ;;  %v146_v28 = vadd.f32 %v138_v24, %v137_v23  ;;  %v140_v31 = vsel %vm132_vm8, %v109_v27, 0.0 }
  0x9e   :  { %144 = vadd.xlane.f32.xlu1 %v143_v26  ;;  %v147_v30 = vadd.f32 %v146_v28, %v139_v29 }
  0xa0   :  { %v148_v32 = vadd.f32 %v147_v30, %v140_v31 }
  0xa2   :  { %149 = vadd.xlane.f32.xlu1 %v148_v32 }
  0xa3   :  { %282 = shalt.err (!%p279_p12)
}
  0xa4   :  { %s283_s14 = scalar_lea.hbm %s419_s4, 16 }
  0xa5   :  { %p284_p13 = scmp.ne.s32.totalorder %s419_s4, %s283_s14  ;;  %p287_p0 = scmp.lt.u32.totalorder %s283_s14, %s419_s4 }
  0xa7   :  { %p289_p1 = pnand %p287_p0, %p284_p13 }
  0xa9   :  { %292 = shalt.err (!%p289_p1)
}
  0xaa   :  { %219 = dma.vmem_to_hbm [thread:$0]  %s217_s9, 16, %s419_s4, [#allocation9]   ;;  %v151_v52 = vld [vmem:[#allocation2] sm:$0xff]  ;;  %v152_v57 = vld [vmem:[#allocation2 + $0x8] sm:$0xff] }
  0xab   :  { %s327_s4 = smov [#allocation7]  }
  0xac   :  { %s206_s21 = sshll.u32 %s327_s4, 4  ;;  %s207_s21 = int_to_ptr.vmem [resolvable:$true] %s206_s21 }
  0xad   :  { %s293_s22 = scalar_lea.vmem %s207_s21, 16  ;;  %s297_s23 = scalar_lea.vmem %s207_s21, 32 }
  0xae   :  { %p294_p2 = scmp.ne.s32.totalorder %s207_s21, %s293_s22  ;;  %p298_p3 = scmp.lt.s32.totalorder %s207_s21, %s207_s21 }
  0xaf   :  { %p299_p4 = scmp.lt.s32.totalorder %s297_s23, %s293_s22 }
  0xb1   :  { %p300_p5 = por %p299_p4, %p298_p3 }
  0xb3   :  { %p301_p6 = pnand %p300_p5, %p294_p2 }
 0x12b   :  { %v145_v50 = vpop.xlane.xlu1 %144 }
 0x12c   :  { %v153_v51 = vsub.f32 0.0, %v145_v50 }
 0x12e   :  { %v155_v53 = vmul.f32 %v153_v51, %v112_v33 }
 0x12f   :  { %v150_v54 = vpop.xlane.xlu1 %149 }
 0x130   :  { %v159_v55 = vadd.f32 %v155_v53, %v151_v52  ;;  %v154_v56 = vsub.f32 0.0, %v150_v54 }
 0x132   :  { %162 = vst.msk [vmem:[#allocation2] sm:$0xff] %vm87_vm0, %v159_v55  ;;  %v156_v58 = vmul.f32 %v154_v56, %v113_v36 }
 0x134   :  { %v160_v59 = vadd.f32 %v156_v58, %v152_v57 }
 0x136   :  { %163 = vst.msk [vmem:[#allocation2 + $0x8] sm:$0xff] %vm87_vm0, %v160_v59 }
 0x139   :  { %v175_v60 = vld [vmem:[#allocation2] sm:$0xff] }
 0x13a   :  { %v177_v62 = vsel %vm87_vm0, %v175_v60, 0.0 }
 0x13d   :  { %v176_v61 = vld [vmem:[#allocation2 + $0x8] sm:$0xff] }
 0x13e   :  { %v178_v63 = vsel %vm87_vm0, %v176_v61, 0.0 }
 0x13f   :  { %v179_v0 = vadd.f32 %v178_v63, %v177_v62 }
 0x141   :  { %v180_v1 = vrot.slane %v179_v0, 4 }
 0x143   :  { %v181_v2 = vadd.f32 %v180_v1, %v179_v0 }
 0x145   :  { %v182_v3 = vrot.slane %v181_v2, 2 }
 0x147   :  { %v183_v4 = vadd.f32 %v182_v3, %v181_v2 }
 0x149   :  { %v184_v5 = vrot.slane %v183_v4, 1 }
 0x14b   :  { %v185_v6 = vadd.f32 %v184_v5, %v183_v4 }
 0x14d   :  { %187 = vst.msk [vmem:[#allocation7] sm:$0x1] %vm186_vm9, %v185_v6 }
 0x14e   :  { %304 = shalt.err (!%p301_p6)
}
 0x14f   :  { %s305_s26 = scalar_lea.hbm %s418_s3, 16 }
 0x150   :  { %p306_p7 = scmp.ne.s32.totalorder %s418_s3, %s305_s26  ;;  %p309_p8 = scmp.lt.u32.totalorder %s305_s26, %s418_s3 }
 0x152   :  { %p311_p9 = pnand %p309_p8, %p306_p7 }
 0x154   :  { %314 = shalt.err (!%p311_p9)
}
 0x155   :  { %209 = dma.vmem_to_hbm [thread:$0]  %s207_s21, 16, %s418_s3, [#allocation6]  }
 0x156   :  { %317 = dma.done.wait [#allocation6], 16  }
 0x157   :  { %318 = vsyncadd [#allocation6], 4294967280 }
 0x158   :  { %319 = dma.done.wait [#allocation9], 16  }
 0x159   :  { %320 = vsyncadd [#allocation9], 4294967280 }
 0x15a   :  { %226 = vsyncpa [#allocation5], 1 }
 0x15b   :  { %227 = vsyncpa [#allocation6], 1 }
 0x15c   :  { %228 = vsyncpa [#allocation9], 1 }

</bundles_post_ra>
